<compile_context>
chip_gen: v6e
topology: v6e:2x2x1
jax: 0.10.0
libtpu: 0.0.40
codegen_flags: <defaults>
</compile_context>

<pallas_src>
import jax
import jax.numpy as jnp
from jax.experimental import pallas as pl
from jax.experimental.pallas import tpu as pltpu

LEAKY_SLOPE = 0.01  # nn.LeakyReLU default negative_slope


def _leaky(v):
    return jnp.where(v > 0, v, LEAKY_SLOPE * v)


def _fused_two_layer_kernel(
    x_ref, t_ref,           # (TILE_B, in_dim) stream dtype, (TILE_B, T) f32
    w1_ref, w2_ref,         # feature Linear weights: (in_dim, H), (H, H)
    rows1_ref, rows2_ref,   # (5, H) f32 per layer: [linear_b; w1; b1; wa1; ba1]
    twT_ref,                # (T, 4) f32 cols: [w0_l1, wa0_l1, w0_l2, wa0_l2]
    tb_ref,                 # SMEM (4,) f32: [b0_l1, ba0_l1, b0_l2, ba0_l2]
    o_ref,                  # (TILE_B, H)
):
    t = t_ref[...]                                           # loaded once
    # All four time->1 projections hoisted into one tiny matmul:
    # (TILE_B, T) @ (T, 4) -> (TILE_B, 4), f32 accumulate.
    hh = jnp.dot(t, twT_ref[...], preferred_element_type=jnp.float32)

    def time_relu(y, rows_ref, li):
        rows = rows_ref[...]                                         # (5, H)
        h = _leaky(hh[:, 2 * li:2 * li + 1] + tb_ref[2 * li])        # (TB, 1)
        ha = _leaky(hh[:, 2 * li + 1:2 * li + 2] + tb_ref[2 * li + 1])
        thr = h * rows[1:2, :] + rows[2:3, :]                        # (TB, H)
        alpha = ha * rows[3:4, :] + rows[4:5, :]                     # (TB, H)
        d = y - thr
        return jnp.where(y > thr, d, alpha * d)

    # ---- layer 1: Linear + TimeReLU (bf16 MXU matmul, f32 accumulate) ----
    y1 = jnp.dot(x_ref[...], w1_ref[...],
                 preferred_element_type=jnp.float32) + rows1_ref[0:1, :]
    h1 = time_relu(y1, rows1_ref, 0)

    # ---- layer 2: Linear + TimeReLU (h1 stays in vregs/VMEM, never HBM) ----
    y2 = jnp.dot(h1.astype(w2_ref.dtype), w2_ref[...],
                 preferred_element_type=jnp.float32) + rows2_ref[0:1, :]
    o_ref[...] = time_relu(y2, rows2_ref, 1).astype(o_ref.dtype)


def _round_up(n, m):
    return (n + m - 1) // m * m


def _pick_tile_b(B, in_dim, T, H, x_bytes, out_bytes, max_tile_b):
    """Largest batch tile (multiple of 256) within a VMEM budget; keeps the
    grid >= 2 steps when possible so both v7x TensorCores get work."""
    bp8 = _round_up(max(B, 1), 8)
    if bp8 <= 256:
        return bp8                                  # one small tile

    def vmem_est(tb):                               # dbl-buffered streams + f32 temps
        stream = 2 * tb * (in_dim * x_bytes + T * 4 + H * out_bytes)
        temps = 8 * tb * H * 4
        return stream + temps

    budget = 20 * 2 ** 20                           # safe across v5e/v6e/v7x
    tile = 256
    cand = 512
    while cand <= max_tile_b and vmem_est(cand) <= budget:
        tile = cand
        cand += 256
    half = max(256, _round_up((bp8 + 1) // 2, 256))  # keep >= 2 grid steps
    return min(tile, half)


def wrapped_gi_feature_forward(params, x, time_v, *, max_tile_b=2048,
                               stream_dtype=jnp.bfloat16,
                               out_dtype=jnp.float32):
    """Equivalent of WrappedGIFeature.forward(x, time_v) for the 2-layer MLP.

    Activations / feature weights stream HBM<->VMEM as `stream_dtype` (bf16 by
    default, MXU-native); matmuls accumulate in f32 and all TimeReLU
    elementwise math runs in f32.  Use stream_dtype=jnp.float32 for a full-f32
    pipeline, and out_dtype=jnp.bfloat16 to also halve output HBM traffic.
    """
    # TimeReLUCompatible squeezes a trailing singleton time axis.
    if time_v.ndim == 3:
        time_v = jnp.squeeze(time_v, axis=2)
    x = x.astype(stream_dtype)
    time_v = time_v.astype(jnp.float32)

    B, in_dim = x.shape
    T = time_v.shape[1]
    l1, l2 = params["layers"]
    H = l1["w"].shape[1]
    # TODO(synk): if H were not a multiple of 128, pad the hidden dim in the
    # wrapper to keep the output BlockSpec lane-dense (H=128 here, so no-op).

    # Pack per-layer row-vector params into one dense f32 VMEM block each.
    def pack_rows(layer):
        p = layer["trelu"]
        return jnp.concatenate(
            [layer["b"].reshape(1, H).astype(jnp.float32),
             p["w1"], p["b1"], p["wa1"], p["ba1"]], axis=0)      # (5, H)

    rows1 = pack_rows(l1)
    rows2 = pack_rows(l2)
    # (T, 4): one column per time->1 projection, consumed by a single matmul.
    twT = jnp.concatenate(
        [l1["trelu"]["w0"], l1["trelu"]["wa0"],
         l2["trelu"]["w0"], l2["trelu"]["wa0"]], axis=0).T       # (T, 4)
    tb = jnp.stack(
        [l1["trelu"]["b0"][0, 0], l1["trelu"]["ba0"][0, 0],
         l2["trelu"]["b0"][0, 0], l2["trelu"]["ba0"][0, 0]])      # (4,) -> SMEM

    w1 = l1["w"].astype(stream_dtype)
    w2 = l2["w"].astype(stream_dtype)

    x_bytes = jnp.dtype(stream_dtype).itemsize
    out_bytes = jnp.dtype(out_dtype).itemsize
    tile_b = _pick_tile_b(B, in_dim, T, H, x_bytes, out_bytes, max_tile_b)
    grid = (pl.cdiv(B, tile_b),)        # ragged last tile handled by masking

    # Explicit scoped-VMEM limit (v5e defaults to only 16 MiB).
    est = (2 * tile_b * (in_dim * x_bytes + T * 4 + H * out_bytes)
           + 8 * tile_b * H * 4
           + 2 * (in_dim * H + H * H) * x_bytes + 12 * H * 4)
    vmem_limit = int(min(48 * 2 ** 20, max(32 * 2 ** 20, 2 * est)))

    batch_spec = lambda shape: pl.BlockSpec(shape, lambda i: (i, 0))
    resident = lambda shape: pl.BlockSpec(shape, lambda i: (0, 0))

    return pl.pallas_call(
        _fused_two_layer_kernel,
        out_shape=jax.ShapeDtypeStruct((B, H), out_dtype),
        grid=grid,
        in_specs=[
            batch_spec((tile_b, in_dim)),                     # x (batch tiled)
            batch_spec((tile_b, T)),                          # times (batch tiled)
            resident((in_dim, H)),                            # W layer 1
            resident((H, H)),                                 # W layer 2
            resident((5, H)),                                 # rows layer 1
            resident((5, H)),                                 # rows layer 2
            resident((T, 4)),                                 # time->1 weights
            pl.BlockSpec(memory_space=pltpu.MemorySpace.SMEM),  # scalar biases
        ],
        out_specs=batch_spec((tile_b, H)),
        compiler_params=pltpu.CompilerParams(
            dimension_semantics=("parallel",),                # v7x: 2 TCs
            vmem_limit_bytes=vmem_limit),
    )(x, time_v, w1, w2, rows1, rows2, twT, tb)


# ----------------------------------------------------------------------------
# Parameter construction (deterministic, mirrors the PyTorch module's shapes).
# ----------------------------------------------------------------------------
def make_timerelu_params(key, time_dim, data_dim):
    ks = jax.random.split(key, 8)
    s = 0.1
    return {
        # model_0: Linear(time_dim, 1)   -> weight (1, time_dim), bias (1, 1)
        "w0": s * jax.random.normal(ks[0], (1, time_dim), jnp.float32),
        "b0": s * jax.random.normal(ks[1], (1, 1), jnp.float32),
        # model_1: Linear(1, data_dim)   -> stored as row vectors (1, data_dim)
        "w1": s * jax.random.normal(ks[2], (1, data_dim), jnp.float32),
        "b1": s * jax.random.normal(ks[3], (1, data_dim), jnp.float32),
        # model_alpha_0 / model_alpha_1 (leaky=True)
        "wa0": s * jax.random.normal(ks[4], (1, time_dim), jnp.float32),
        "ba0": s * jax.random.normal(ks[5], (1, 1), jnp.float32),
        "wa1": s * jax.random.normal(ks[6], (1, data_dim), jnp.float32),
        "ba1": s * jax.random.normal(ks[7], (1, data_dim), jnp.float32),
    }


def make_wrapped_gi_feature_params(key, in_dim, hidden, time_dim):
    k1, k2, k3, k4 = jax.random.split(key, 4)
    return {
        "layers": [
            {"w": 0.1 * jax.random.normal(k1, (in_dim, hidden), jnp.float32),
             "b": 0.1 * jax.random.normal(k2, (hidden,), jnp.float32),
             "trelu": make_timerelu_params(k3, time_dim, hidden)},
            {"w": 0.1 * jax.random.normal(k4, (hidden, hidden), jnp.float32),
             "b": 0.1 * jax.random.normal(jax.random.fold_in(k4, 1),
                                          (hidden,), jnp.float32),
             "trelu": make_timerelu_params(jax.random.fold_in(k3, 1),
                                           time_dim, hidden)},
        ]
    }


# ----------------------------------------------------------------------------
# Pure-JAX reference (high-precision f32 matmuls) for a sanity check.
# ----------------------------------------------------------------------------
def reference_forward(params, x, time_v):
    if time_v.ndim == 3:
        time_v = jnp.squeeze(time_v, axis=2)
    hp = jax.lax.Precision.HIGHEST
    h = x
    for layer in params["layers"]:
        y = jnp.dot(h, layer["w"], precision=hp) + layer["b"]
        p = layer["trelu"]
        thr = _leaky(jnp.dot(time_v, p["w0"].T, precision=hp) + p["b0"]) \
            * p["w1"] + p["b1"]
        alpha = _leaky(jnp.dot(time_v, p["wa0"].T, precision=hp) + p["ba0"]) \
            * p["wa1"] + p["ba1"]
        h = jnp.where(y > thr, y - thr, alpha * (y - thr))
    return h


if __name__ == "__main__":
    # B=10 (not a multiple of the 8-row sublane) exercises the no-pad ragged
    # batch-tile path; time_v arrives as (B, time_dim, 1) to hit squeeze(2).
    B, IN_DIM, HIDDEN, TIME_DIM = 10, 32, 128, 8

    key = jax.random.PRNGKey(0)
    kx, kt, kp = jax.random.split(key, 3)
    x = jax.random.normal(kx, (B, IN_DIM), jnp.float32)
    time_v = jax.random.normal(kt, (B, TIME_DIM, 1), jnp.float32)

    params = make_wrapped_gi_feature_params(kp, IN_DIM, HIDDEN, TIME_DIM)

    fwd = jax.jit(wrapped_gi_feature_forward)
    out = jax.block_until_ready(fwd(params, x, time_v))

    ref = reference_forward(params, x, time_v)
    assert out.shape == (B, HIDDEN)
    assert out.dtype == jnp.float32
    # bf16-streamed matmuls (f32 accumulate) vs HIGHEST-precision f32 reference.
    assert jnp.allclose(out, ref, atol=5e-2, rtol=5e-2), "mismatch vs reference"

    print("KERNEL_OK")
</pallas_src>

<mosaic_0001>
module attributes {stable_mosaic.version = 11 : i64} {
  func.func @_fused_two_layer_kernel(%arg0: i32, %arg1: memref<16x32xbf16, #tpu.memory_space<vmem>>, %arg2: memref<16x8xf32, #tpu.memory_space<vmem>>, %arg3: memref<32x128xbf16, #tpu.memory_space<vmem>>, %arg4: memref<128x128xbf16, #tpu.memory_space<vmem>>, %arg5: memref<5x128xf32, #tpu.memory_space<vmem>>, %arg6: memref<5x128xf32, #tpu.memory_space<vmem>>, %arg7: memref<8x4xf32, #tpu.memory_space<vmem>>, %arg8: memref<4xf32, #tpu.memory_space<smem>>, %arg9: memref<16x128xf32, #tpu.memory_space<vmem>>) attributes {dimension_semantics = [#tpu.dimension_semantics<parallel>], iteration_bounds = array<i64: 1>, scalar_prefetch = 0 : i64, scratch_operands = 0 : i64, tpu.core_type = #tpu.core_type<tc>, window_params = [{transform_indices = @transform_0, window_bounds = array<i64: 16, 32>}, {transform_indices = @transform_1, window_bounds = array<i64: 16, 8>}, {pipeline_mode = #tpu.pipeline_mode<synchronous>, transform_indices = @transform_2, window_bounds = array<i64: 32, 128>}, {pipeline_mode = #tpu.pipeline_mode<synchronous>, transform_indices = @transform_3, window_bounds = array<i64: 128, 128>}, {pipeline_mode = #tpu.pipeline_mode<synchronous>, transform_indices = @transform_4, window_bounds = array<i64: 5, 128>}, {pipeline_mode = #tpu.pipeline_mode<synchronous>, transform_indices = @transform_5, window_bounds = array<i64: 5, 128>}, {pipeline_mode = #tpu.pipeline_mode<synchronous>, transform_indices = @transform_6, window_bounds = array<i64: 8, 4>}, {transform_indices = @transform_7, window_bounds = array<i64: 4>}, {transform_indices = @transform_8, window_bounds = array<i64: 16, 128>}]} {
    %c0 = arith.constant 0 : index
    %c0_0 = arith.constant 0 : index
    %0 = vector.load %arg2[%c0, %c0_0] : memref<16x8xf32, #tpu.memory_space<vmem>>, vector<16x8xf32>
    %c0_1 = arith.constant 0 : index
    %c0_2 = arith.constant 0 : index
    %1 = vector.load %arg7[%c0_1, %c0_2] : memref<8x4xf32, #tpu.memory_space<vmem>>, vector<8x4xf32>
    %cst = arith.constant dense<0.000000e+00> : vector<16x4xf32>
    %2 = tpu.matmul %0, %1, %cst {dimension_numbers = #tpu.dot_dimension_numbers<[1], [0], [0], [1], [0, 0, 1, 1], [], []>} : vector<16x8xf32>, vector<8x4xf32>, vector<16x4xf32> -> vector<16x4xf32>
    %c0_3 = arith.constant 0 : index
    %c0_4 = arith.constant 0 : index
    %3 = vector.load %arg1[%c0_3, %c0_4] : memref<16x32xbf16, #tpu.memory_space<vmem>>, vector<16x32xbf16>
    %c0_5 = arith.constant 0 : index
    %c0_6 = arith.constant 0 : index
    %4 = vector.load %arg3[%c0_5, %c0_6] : memref<32x128xbf16, #tpu.memory_space<vmem>>, vector<32x128xbf16>
    %cst_7 = arith.constant dense<0.000000e+00> : vector<16x128xf32>
    %5 = tpu.matmul %3, %4, %cst_7 {dimension_numbers = #tpu.dot_dimension_numbers<[1], [0], [0], [1], [0, 0, 1, 1], [], []>} : vector<16x32xbf16>, vector<32x128xbf16>, vector<16x128xf32> -> vector<16x128xf32>
    %c0_8 = arith.constant 0 : index
    %c0_9 = arith.constant 0 : index
    %6 = vector.load %arg5[%c0_8, %c0_9] : memref<5x128xf32, #tpu.memory_space<vmem>>, vector<1x128xf32>
    %7 = vector.broadcast %6 : vector<1x128xf32> to vector<16x128xf32>
    %8 = arith.addf %5, %7 : vector<16x128xf32>
    %c0_10 = arith.constant 0 : index
    %c0_11 = arith.constant 0 : index
    %9 = vector.load %arg5[%c0_10, %c0_11] : memref<5x128xf32, #tpu.memory_space<vmem>>, vector<5x128xf32>
    %10 = vector.extract_strided_slice %2 {offsets = [0, 0], sizes = [16, 1], strides = [1, 1]} : vector<16x4xf32> to vector<16x1xf32>
    %c0_12 = arith.constant 0 : index
    %11 = memref.load %arg8[%c0_12] : memref<4xf32, #tpu.memory_space<smem>>
    %12 = vector.broadcast %11 : f32 to vector<16x1xf32>
    %13 = arith.addf %10, %12 : vector<16x1xf32>
    %cst_13 = arith.constant 0.000000e+00 : f32
    %14 = vector.broadcast %cst_13 : f32 to vector<16x1xf32>
    %15 = arith.cmpf ogt, %13, %14 : vector<16x1xf32>
    %cst_14 = arith.constant 0.00999999977 : f32
    %16 = vector.broadcast %cst_14 : f32 to vector<16x1xf32>
    %17 = arith.mulf %16, %13 : vector<16x1xf32>
    %18 = arith.select %15, %13, %17 : vector<16x1xi1>, vector<16x1xf32>
    %19 = vector.extract_strided_slice %2 {offsets = [0, 1], sizes = [16, 1], strides = [1, 1]} : vector<16x4xf32> to vector<16x1xf32>
    %c1 = arith.constant 1 : index
    %20 = memref.load %arg8[%c1] : memref<4xf32, #tpu.memory_space<smem>>
    %21 = vector.broadcast %20 : f32 to vector<16x1xf32>
    %22 = arith.addf %19, %21 : vector<16x1xf32>
    %cst_15 = arith.constant 0.000000e+00 : f32
    %23 = vector.broadcast %cst_15 : f32 to vector<16x1xf32>
    %24 = arith.cmpf ogt, %22, %23 : vector<16x1xf32>
    %cst_16 = arith.constant 0.00999999977 : f32
    %25 = vector.broadcast %cst_16 : f32 to vector<16x1xf32>
    %26 = arith.mulf %25, %22 : vector<16x1xf32>
    %27 = arith.select %24, %22, %26 : vector<16x1xi1>, vector<16x1xf32>
    %28 = vector.extract_strided_slice %9 {offsets = [1, 0], sizes = [1, 128], strides = [1, 1]} : vector<5x128xf32> to vector<1x128xf32>
    %29 = vector.broadcast %18 : vector<16x1xf32> to vector<16x128xf32>
    %30 = vector.broadcast %28 : vector<1x128xf32> to vector<16x128xf32>
    %31 = arith.mulf %29, %30 : vector<16x128xf32>
    %32 = vector.extract_strided_slice %9 {offsets = [2, 0], sizes = [1, 128], strides = [1, 1]} : vector<5x128xf32> to vector<1x128xf32>
    %33 = vector.broadcast %32 : vector<1x128xf32> to vector<16x128xf32>
    %34 = arith.addf %31, %33 : vector<16x128xf32>
    %35 = vector.extract_strided_slice %9 {offsets = [3, 0], sizes = [1, 128], strides = [1, 1]} : vector<5x128xf32> to vector<1x128xf32>
    %36 = vector.broadcast %27 : vector<16x1xf32> to vector<16x128xf32>
    %37 = vector.broadcast %35 : vector<1x128xf32> to vector<16x128xf32>
    %38 = arith.mulf %36, %37 : vector<16x128xf32>
    %39 = vector.extract_strided_slice %9 {offsets = [4, 0], sizes = [1, 128], strides = [1, 1]} : vector<5x128xf32> to vector<1x128xf32>
    %40 = vector.broadcast %39 : vector<1x128xf32> to vector<16x128xf32>
    %41 = arith.addf %38, %40 : vector<16x128xf32>
    %42 = arith.subf %8, %34 : vector<16x128xf32>
    %43 = arith.cmpf ogt, %8, %34 : vector<16x128xf32>
    %44 = arith.mulf %41, %42 : vector<16x128xf32>
    %45 = arith.select %43, %42, %44 : vector<16x128xi1>, vector<16x128xf32>
    %46 = arith.truncf %45 : vector<16x128xf32> to vector<16x128xbf16>
    %c0_17 = arith.constant 0 : index
    %c0_18 = arith.constant 0 : index
    %47 = vector.load %arg4[%c0_17, %c0_18] : memref<128x128xbf16, #tpu.memory_space<vmem>>, vector<128x128xbf16>
    %cst_19 = arith.constant dense<0.000000e+00> : vector<16x128xf32>
    %48 = tpu.matmul %46, %47, %cst_19 {dimension_numbers = #tpu.dot_dimension_numbers<[1], [0], [0], [1], [0, 0, 1, 1], [], []>} : vector<16x128xbf16>, vector<128x128xbf16>, vector<16x128xf32> -> vector<16x128xf32>
    %c0_20 = arith.constant 0 : index
    %c0_21 = arith.constant 0 : index
    %49 = vector.load %arg6[%c0_20, %c0_21] : memref<5x128xf32, #tpu.memory_space<vmem>>, vector<1x128xf32>
    %50 = vector.broadcast %49 : vector<1x128xf32> to vector<16x128xf32>
    %51 = arith.addf %48, %50 : vector<16x128xf32>
    %c0_22 = arith.constant 0 : index
    %c0_23 = arith.constant 0 : index
    %52 = vector.load %arg6[%c0_22, %c0_23] : memref<5x128xf32, #tpu.memory_space<vmem>>, vector<5x128xf32>
    %53 = vector.extract_strided_slice %2 {offsets = [0, 2], sizes = [16, 1], strides = [1, 1]} : vector<16x4xf32> to vector<16x1xf32>
    %c2 = arith.constant 2 : index
    %54 = memref.load %arg8[%c2] : memref<4xf32, #tpu.memory_space<smem>>
    %55 = vector.broadcast %54 : f32 to vector<16x1xf32>
    %56 = arith.addf %53, %55 : vector<16x1xf32>
    %cst_24 = arith.constant 0.000000e+00 : f32
    %57 = vector.broadcast %cst_24 : f32 to vector<16x1xf32>
    %58 = arith.cmpf ogt, %56, %57 : vector<16x1xf32>
    %cst_25 = arith.constant 0.00999999977 : f32
    %59 = vector.broadcast %cst_25 : f32 to vector<16x1xf32>
    %60 = arith.mulf %59, %56 : vector<16x1xf32>
    %61 = arith.select %58, %56, %60 : vector<16x1xi1>, vector<16x1xf32>
    %62 = vector.extract_strided_slice %2 {offsets = [0, 3], sizes = [16, 1], strides = [1, 1]} : vector<16x4xf32> to vector<16x1xf32>
    %c3 = arith.constant 3 : index
    %63 = memref.load %arg8[%c3] : memref<4xf32, #tpu.memory_space<smem>>
    %64 = vector.broadcast %63 : f32 to vector<16x1xf32>
    %65 = arith.addf %62, %64 : vector<16x1xf32>
    %cst_26 = arith.constant 0.000000e+00 : f32
    %66 = vector.broadcast %cst_26 : f32 to vector<16x1xf32>
    %67 = arith.cmpf ogt, %65, %66 : vector<16x1xf32>
    %cst_27 = arith.constant 0.00999999977 : f32
    %68 = vector.broadcast %cst_27 : f32 to vector<16x1xf32>
    %69 = arith.mulf %68, %65 : vector<16x1xf32>
    %70 = arith.select %67, %65, %69 : vector<16x1xi1>, vector<16x1xf32>
    %71 = vector.extract_strided_slice %52 {offsets = [1, 0], sizes = [1, 128], strides = [1, 1]} : vector<5x128xf32> to vector<1x128xf32>
    %72 = vector.broadcast %61 : vector<16x1xf32> to vector<16x128xf32>
    %73 = vector.broadcast %71 : vector<1x128xf32> to vector<16x128xf32>
    %74 = arith.mulf %72, %73 : vector<16x128xf32>
    %75 = vector.extract_strided_slice %52 {offsets = [2, 0], sizes = [1, 128], strides = [1, 1]} : vector<5x128xf32> to vector<1x128xf32>
    %76 = vector.broadcast %75 : vector<1x128xf32> to vector<16x128xf32>
    %77 = arith.addf %74, %76 : vector<16x128xf32>
    %78 = vector.extract_strided_slice %52 {offsets = [3, 0], sizes = [1, 128], strides = [1, 1]} : vector<5x128xf32> to vector<1x128xf32>
    %79 = vector.broadcast %70 : vector<16x1xf32> to vector<16x128xf32>
    %80 = vector.broadcast %78 : vector<1x128xf32> to vector<16x128xf32>
    %81 = arith.mulf %79, %80 : vector<16x128xf32>
    %82 = vector.extract_strided_slice %52 {offsets = [4, 0], sizes = [1, 128], strides = [1, 1]} : vector<5x128xf32> to vector<1x128xf32>
    %83 = vector.broadcast %82 : vector<1x128xf32> to vector<16x128xf32>
    %84 = arith.addf %81, %83 : vector<16x128xf32>
    %85 = arith.subf %51, %77 : vector<16x128xf32>
    %86 = arith.cmpf ogt, %51, %77 : vector<16x128xf32>
    %87 = arith.mulf %84, %85 : vector<16x128xf32>
    %88 = arith.select %86, %85, %87 : vector<16x128xi1>, vector<16x128xf32>
    %c0_28 = arith.constant 0 : index
    %c0_29 = arith.constant 0 : index
    %89 = vector.load %arg9[%c0_28, %c0_29] : memref<16x128xf32, #tpu.memory_space<vmem>>, vector<16x128xf32>
    tpu.vector_store %arg9[%c0_28, %c0_29], %88 {strides = array<i32>} : memref<16x128xf32, #tpu.memory_space<vmem>>, vector<16x128xf32>,
    return
  }
  func.func @transform_0(%arg0: i32) -> (i32, i32) {
    %c0_i32 = arith.constant 0 : i32
    %c0_i32_0 = arith.constant 0 : i32
    return %arg0, %c0_i32 : i32, i32
  }
  func.func @transform_1(%arg0: i32) -> (i32, i32) {
    %c0_i32 = arith.constant 0 : i32
    %c0_i32_0 = arith.constant 0 : i32
    return %arg0, %c0_i32 : i32, i32
  }
  func.func @transform_2(%arg0: i32) -> (i32, i32) {
    %c0_i32 = arith.constant 0 : i32
    %c0_i32_0 = arith.constant 0 : i32
    %c0_i32_1 = arith.constant 0 : i32
    return %c0_i32, %c0_i32_0 : i32, i32
  }
  func.func @transform_3(%arg0: i32) -> (i32, i32) {
    %c0_i32 = arith.constant 0 : i32
    %c0_i32_0 = arith.constant 0 : i32
    %c0_i32_1 = arith.constant 0 : i32
    return %c0_i32, %c0_i32_0 : i32, i32
  }
  func.func @transform_4(%arg0: i32) -> (i32, i32) {
    %c0_i32 = arith.constant 0 : i32
    %c0_i32_0 = arith.constant 0 : i32
    %c0_i32_1 = arith.constant 0 : i32
    return %c0_i32, %c0_i32_0 : i32, i32
  }
  func.func @transform_5(%arg0: i32) -> (i32, i32) {
    %c0_i32 = arith.constant 0 : i32
    %c0_i32_0 = arith.constant 0 : i32
    %c0_i32_1 = arith.constant 0 : i32
    return %c0_i32, %c0_i32_0 : i32, i32
  }
  func.func @transform_6(%arg0: i32) -> (i32, i32) {
    %c0_i32 = arith.constant 0 : i32
    %c0_i32_0 = arith.constant 0 : i32
    %c0_i32_1 = arith.constant 0 : i32
    return %c0_i32, %c0_i32_0 : i32, i32
  }
  func.func @transform_7(%arg0: i32) -> i32 {
    %c0_i32 = arith.constant 0 : i32
    %c0_i32_0 = arith.constant 0 : i32
    return %c0_i32 : i32
  }
  func.func @transform_8(%arg0: i32) -> (i32, i32) {
    %c0_i32 = arith.constant 0 : i32
    %c0_i32_0 = arith.constant 0 : i32
    return %arg0, %c0_i32 : i32, i32
  }
}

</mosaic_0001>

<bundles_post_ra>
// kernel: wrapped_gi_feature_forward.1
= control target key start
LH: loop header
LB: loop body
LE: loop exit
PB: predicated region body
PF: predicated region fallthrough
CT: control target
= control target key end

     0   :  { %13 = vsyncpa [#allocation4], 0  ;;  %s738_s0 = inlined_call_operand.vmem [shape: bf16[10,32], index: 0, kind: input, shape index: {}]   ;;  %s739_s1 = inlined_call_operand.vmem [shape: f32[10,8], index: 1, kind: input, shape index: {}]   ;;  %s740_s2 = inlined_call_operand.vmem [shape: bf16[32,128], index: 2, kind: input, shape index: {}]   ;;  %s741_s3 = inlined_call_operand.vmem [shape: bf16[128,128], index: 3, kind: input, shape index: {}]   ;;  %s742_s4 = inlined_call_operand.vmem [shape: f32[5,128], index: 4, kind: input, shape index: {}]   ;;  %s743_s5 = inlined_call_operand.vmem [shape: f32[5,128], index: 5, kind: input, shape index: {}]   ;;  %s744_s6 = inlined_call_operand.vmem [shape: f32[8,4], index: 6, kind: input, shape index: {}]   ;;  %s745_s7 = inlined_call_operand.vmem [shape: f32[4], index: 7, kind: input, shape index: {}]   ;;  %s746_s8 = inlined_call_operand.hbm [shape: f32[10,128], index: 8, kind: output, shape index: {}]  }
   0x1   :  { %14 = vsyncpa [#allocation3], 0  ;;  %s35_s29 = sshll.u32 %s745_s7, 4  ;;  %s36_s29 = int_to_ptr.vmem [resolvable:$true] %s35_s29 }
   0x2   :  { %s572_s30 = scalar_lea.vmem %s36_s29, 16  ;;  %p577_p1 = scmp.lt.s32.totalorder %s36_s29, %s36_s29 }
   0x3   :  { %p573_p0 = scmp.ne.s32.totalorder %s36_s29, %s572_s30  ;;  %p578_p2 = scmp.lt.s32.totalorder %s572_s30, %s572_s30 }
   0x5   :  { %p579_p3 = por %p578_p2, %p577_p1 }
   0x7   :  { %p580_p4 = pnand %p579_p3, %p573_p0 }
   0x9   :  { %583 = shalt.err (!%p580_p4)
}
   0xa   :  { %s608_s9 = smov [#allocation2]  }
   0xb   :  { %38 = dma.vmem_to_smem %s36_s29, 16, %s608_s9, [#allocation4]  }
   0xc   :  { %604 = dma.done.wait [#allocation4], 16  }
   0xd   :  { %605 = vsyncadd [#allocation4], 4294967280 }
   0xe   :  { %42 = sfence }
   0xf   :  { %v46_v0 = vld [vmem:[%s744_s6] sm:$0xff]  ;;  %vm47_vm0 = vcmask 64512   ;;  %v45_v2 = vld [vmem:[%s739_s1 + $0x8] sm:$0xff]  ;;  %v609_v4 = vmov 0.0   ;;  %vm157_vm1 = vcmask 261120   ;;  %vm610_vm2 = vmmov 0  }
  0x10   :  { %v44_v1 = vld [vmem:[%s739_s1] sm:$0xff]  ;;  %512 = vmatprep.subr.mxu1 %v46_v0  ;;  %v561_v3 = vld [vmem:[%s740_s2 + $0x8] sm:$0xff]   ;;  %525 = vmatprep.subr.bf16.mxu0 %v609_v4  ;;  %v611_v7 = vmov 1   ;;  %v612_v8 = vmov 0   ;;  %v564_v9 = vld [vmem:[%s741_s3 + $0x38] sm:$0xff]   ;;  %s203_s25 = sld [smem:[#allocation2]]  ;;  %v233_v53 = vlaneseq }
  0x11   :  { %514 = vmatprep.mubr.msk.f32.mxu1 %vm47_vm0, %v44_v1  ;;  %513 = vmatpush3.msra.mxu1 %v46_v0  ;;  %v562_v5 = vld [vmem:[%s740_s2] sm:$0xff]   ;;  %v565_v10 = vld [vmem:[%s741_s3 + $0x30] sm:$0xff]   ;;  %v566_v11 = vld [vmem:[%s741_s3 + $0x28] sm:$0xff]   ;;  %s485_s26 = sld [smem:[#allocation2 + $0x1]]  ;;  %v613_v44 = vmov 2   ;;  %v614_v50 = vmov 3  }
  0x12   :  { %515 = vmatmul.mubr.msk.f32.vlgmr.msra.gmra.mxu1 %vm47_vm0, %v45_v2  ;;  %517 = vmatprep.subr.bf16.mxu1 %v609_v4  ;;  %v563_v6 = vld [vmem:[%s738_s0] sm:$0xff]   ;;  %s495_s27 = sld [smem:[#allocation2 + $0x2]]  ;;  %v568_v31 = vld [vmem:[%s741_s3 + $0x18] sm:$0xff]   ;;  %v569_v39 = vld [vmem:[%s741_s3 + $0x10] sm:$0xff]   ;;  %v234_v54 = vshrl.u32 %v233_v53, 7  ;;  %s615_s18 = smov [#allocation5]  }
  0x13   :  { %518 = vmatpush3.bf16.msra.mxu1 %v561_v3  ;;  %521 = vmatprep.mubr.msk.bf16.mxu1 %vm610_vm2, %v609_v4  ;;  %v567_v12 = vld [vmem:[%s741_s3 + $0x20] sm:$0xff]   ;;  %s705_s28 = sld [smem:[#allocation2 + $0x3]]  ;;  %v570_v43 = vld [vmem:[%s741_s3 + $0x8] sm:$0xff]   ;;  %s466_s2 = sshll.u32 %s615_s18, 4  ;;  %s467_s2 = int_to_ptr.vmem [resolvable:$true] %s466_s2 }
  0x14   :  { %519 = vmatprep.subr.bf16.mxu1 %v609_v4  ;;  %541 = vmatprep.mubr.msk.bf16.mxu0 %vm610_vm2, %v609_v4  ;;  %v571_v49 = vld [vmem:[%s741_s3] sm:$0xff]   ;;  %v235_v55 = vsub.s32 1, %v234_v54  ;;  %v257_v57 = vsub.s32 3, %v234_v54  ;;  %v241_v58 = vsub.s32 2, %v234_v54  ;;  %v263_v62 = vsub.s32 4, %v234_v54  ;;  %p589_p6 = scmp.lt.s32.totalorder %s467_s2, %s467_s2 }
  0x15   :  { %556 = vset.pattern.permute.xlu1 %v611_v7  ;;  %555 = vset.pattern.permute.xlu0 %v612_v8  ;;  %v202_v56 = vld [vmem:[%s742_s4] sm:$0x1f] }
  0x16   :  { %526 = vmatpush3.bf16.msra.mxu0 %v564_v9  ;;  %v204_v14 = vstv %s203_s25  ;;  %v236_v59 = vrot.slane %v202_v56, %v235_v55  ;;  %v480_v60 = vld [vmem:[%s742_s4] ss:$0 sm:$0xff]  ;;  %v258_v61 = vrot.slane %v202_v56, %v257_v57  ;;  %v242_v63 = vrot.slane %v202_v56, %v241_v58 }
  0x17   :  { %520 = vmatpush3.bf16.msra.mxu1 %v562_v5  ;;  %527 = vmatprep.subr.bf16.mxu0 %v609_v4  ;;  %v214_v15 = vstv %s485_s26  ;;  %v386_v7 = vld [vmem:[%s743_s5] sm:$0x1f] }
  0x18   :  { %v388_v21 = vstv %s495_s27 }
  0x19   :  { %v398_v32 = vstv %s705_s28 }
  0x1a   :  { %522 = vmatmul.mubr.msk.bf16.vlgmr.msra.gmra.mxu1 %vm157_vm1, %v563_v6  ;;  %528 = vmatpush3.bf16.msra.mxu0 %v565_v10 }
  0x1b   :  { %529 = vmatprep.subr.bf16.mxu0 %v609_v4 }
  0x1e   :  { %530 = vmatpush3.bf16.msra.mxu0 %v566_v11 }
  0x1f   :  { %531 = vmatprep.subr.bf16.mxu0 %v609_v4 }
  0x22   :  { %532 = vmatpush3.bf16.msra.mxu0 %v567_v12 }
  0x23   :  { %533 = vmatprep.subr.bf16.mxu0 %v609_v4 }
  0x26   :  { %534 = vmatpush3.bf16.msra.mxu0 %v568_v31  ;;  %v442_v31 = vrot.slane %v386_v7, %v257_v57 }
  0x27   :  { %535 = vmatprep.subr.bf16.mxu0 %v609_v4 }
  0x2a   :  { %536 = vmatpush3.bf16.msra.mxu0 %v569_v39 }
  0x2b   :  { %537 = vmatprep.subr.bf16.mxu0 %v609_v4 }
  0x2e   :  { %538 = vmatpush3.bf16.msra.mxu0 %v570_v43 }
  0x2f   :  { %539 = vmatprep.subr.bf16.mxu0 %v609_v4  ;;  %v264_v4 = vrot.slane %v202_v56, %v263_v62 }
  0x32   :  { %540 = vmatpush3.bf16.msra.mxu0 %v571_v49 }
  0xd2   :  { %v516_v13 = vpop.f32.mrf.mxu1 }
  0xd3   :  { %v206_v17 = vadd.f32 %v516_v13, %v204_v14  ;;  %v216_v18 = vadd.f32 %v516_v13, %v214_v15  ;;  %v390_v28 = vadd.f32 %v516_v13, %v388_v21  ;;  %v400_v40 = vadd.f32 %v516_v13, %v398_v32 }
  0xd4   :  { %v120_v16 = vpop.f32.mrf.mxu1  ;;  %v420_v13 = vrot.slane %v386_v7, %v235_v55 }
  0xd5   :  { %v215_v19 = vadd.f32 %v214_v15, %v120_v16  ;;  %v205_v20 = vadd.f32 %v204_v14, %v120_v16  ;;  %v220_v26 = vmul.f32 0.01, %v216_v18  ;;  %v210_v27 = vmul.f32 0.01, %v206_v17 }
  0xd6   :  { %v389_v29 = vadd.f32 %v388_v21, %v120_v16  ;;  %vm218_vm5 = vcmp.gt.f32.partialorder %v216_v18, 0.0  ;;  %vm208_vm6 = vcmp.gt.f32.partialorder %v206_v17, 0.0  ;;  %v394_v36 = vmul.f32 0.01, %v390_v28 }
  0xd7   :  { %vm217_vm3 = vcmp.gt.f32.partialorder %v215_v19, 0.0  ;;  %v219_v22 = vmul.f32 0.01, %v215_v19  ;;  %vm207_vm4 = vcmp.gt.f32.partialorder %v205_v20, 0.0  ;;  %v209_v23 = vmul.f32 0.01, %v205_v20 }
  0xd8   :  { %v222_v34 = vsel %vm218_vm5, %v216_v18, %v220_v26  ;;  %v212_v35 = vsel %vm208_vm6, %v206_v17, %v210_v27  ;;  %v393_v37 = vmul.f32 0.01, %v389_v29  ;;  %v399_v41 = vadd.f32 %v398_v32, %v120_v16 }
  0xd9   :  { %v221_v24 = vsel %vm217_vm3, %v215_v19, %v219_v22  ;;  %v211_v25 = vsel %vm207_vm4, %v205_v20, %v209_v23  ;;  %vm392_vm7 = vcmp.gt.f32.partialorder %v390_v28, 0.0  ;;  %vm391_vm8 = vcmp.gt.f32.partialorder %v389_v29, 0.0 }
  0xda   :  { %247 = vperm.xlu1 %556, %v221_v24   ;;  %225 = vperm.xlu0 %555, %v211_v25   ;;  %v195_v30 = vpop.f32.mrf.mxu1  ;;  %v396_v45 = vsel %vm392_vm7, %v390_v28, %v394_v36  ;;  %v395_v46 = vsel %vm391_vm8, %v389_v29, %v393_v37  ;;  %v403_v47 = vmul.f32 0.01, %v399_v41  ;;  %v404_v48 = vmul.f32 0.01, %v400_v40 }
  0xdb   :  { %vm401_vm9 = vcmp.gt.f32.partialorder %v399_v41, 0.0  ;;  %vm402_vm10 = vcmp.gt.f32.partialorder %v400_v40, 0.0  ;;  %v196_v2 = vadd.f32 %v480_v60, %v195_v30  ;;  %v426_v17 = vrot.slane %v386_v7, %v241_v58 }
  0xdc   :  { %v523_v33 = vpop.f32.mrf.mxu1  ;;  %v405_v51 = vsel %vm401_vm9, %v399_v41, %v403_v47  ;;  %v406_v52 = vsel %vm402_vm10, %v400_v40, %v404_v48 }
  0xdd   :  { %v486_v33 = vld [vmem:[%s743_s5] ss:$0 sm:$0xff]  ;;  %s584_s5 = scalar_lea.vmem %s467_s2, 256 }
  0xde   :  { %252 = vperm.xlu1 %556, %v222_v34   ;;  %230 = vperm.xlu0 %555, %v212_v35   ;;  %v198_v38 = vpop.f32.mrf.mxu1  ;;  %v448_v34 = vrot.slane %v386_v7, %v263_v62  ;;  %p585_p5 = scmp.ne.s32.totalorder %s467_s2, %s584_s5  ;;  %p590_p7 = scmp.lt.s32.totalorder %s584_s5, %s584_s5 }
  0xdf   :  { %v199_v15 = vadd.f32 %v480_v60, %v198_v38 }
  0xe0   :  { %v524_v42 = vpop.f32.mrf.mxu1  ;;  %p591_p8 = por %p590_p7, %p589_p6 }
  0xe2   :  { %557 = vset.pattern.permute.xlu1 %v613_v44  ;;  %558 = vset.pattern.permute.xlu0 %v613_v44  ;;  %p592_p9 = pnand %p591_p8, %p585_p5 }
  0xe3   :  { %414 = vperm.xlu1 %557, %v396_v45   ;;  %409 = vperm.xlu0 %558, %v395_v46  }
  0xe7   :  { %559 = vset.pattern.permute.xlu1 %v614_v50  ;;  %560 = vset.pattern.permute.xlu0 %v614_v50 }
  0xe8   :  { %431 = vperm.xlu1 %559, %v405_v51   ;;  %436 = vperm.xlu0 %560, %v406_v52  }
 0x155   :  { %v248_v0 = vpop.permute.xlu1 %247  ;;  %v226_v1 = vpop.permute.xlu0 %225 }
 0x156   :  { %v237_v3 = vmul.f32 %v236_v59, %v226_v1  ;;  %v259_v5 = vmul.f32 %v258_v61, %v248_v0 }
 0x158   :  { %v243_v6 = vadd.f32 %v242_v63, %v237_v3  ;;  %v265_v14 = vadd.f32 %v264_v4, %v259_v5 }
 0x159   :  { %v253_v8 = vpop.permute.xlu1 %252  ;;  %v231_v9 = vpop.permute.xlu0 %230 }
 0x15a   :  { %v267_v10 = vsub.f32 %v196_v2, %v243_v6  ;;  %v260_v11 = vmul.f32 %v258_v61, %v253_v8  ;;  %v238_v12 = vmul.f32 %v236_v59, %v231_v9  ;;  %vm269_vm11 = vcmp.gt.f32.partialorder %v196_v2, %v243_v6 }
 0x15c   :  { %v244_v16 = vadd.f32 %v242_v63, %v238_v12  ;;  %v271_v18 = vmul.f32 %v267_v10, %v265_v14  ;;  %v266_v19 = vadd.f32 %v264_v4, %v260_v11 }
 0x15e   :  { %v268_v20 = vsub.f32 %v199_v15, %v244_v16  ;;  %v415_v21 = vpop.permute.xlu1 %414  ;;  %v410_v22 = vpop.permute.xlu0 %409  ;;  %vm270_vm12 = vcmp.gt.f32.partialorder %v199_v15, %v244_v16  ;;  %v273_v28 = vsel %vm269_vm11, %v267_v10, %v271_v18 }
 0x15f   :  { %v422_v23 = vmul.f32 %v420_v13, %v415_v21  ;;  %v421_v24 = vmul.f32 %v420_v13, %v410_v22 }
 0x160   :  { %v272_v25 = vmul.f32 %v268_v20, %v266_v19 }
 0x161   :  { %v428_v26 = vadd.f32 %v426_v17, %v422_v23  ;;  %v427_v27 = vadd.f32 %v426_v17, %v421_v24 }
 0x162   :  { %v274_v29 = vsel %vm270_vm12, %v268_v20, %v272_v25 }
 0x163   :  { %v275_v30 = vpack.c.bf16 %v274_v29, %v273_v28  ;;  %v432_v32 = vpop.permute.xlu1 %431  ;;  %v437_v36 = vpop.permute.xlu0 %436 }
 0x164   :  { %v443_v35 = vmul.f32 %v442_v31, %v432_v32  ;;  %v444_v41 = vmul.f32 %v442_v31, %v437_v36 }
 0x165   :  { %542 = vmatmul.mubr.bf16.vlgmr.msra.gmra.mxu0 %v275_v30 }
 0x166   :  { %v449_v40 = vadd.f32 %v448_v34, %v443_v35  ;;  %v450_v47 = vadd.f32 %v448_v34, %v444_v41 }
 0x225   :  { %v379_v37 = vpop.f32.mrf.mxu0 }
 0x226   :  { %v380_v38 = vadd.f32 %v486_v33, %v379_v37 }
 0x227   :  { %v543_v39 = vpop.f32.mrf.mxu0 }
 0x228   :  { %v451_v42 = vsub.f32 %v380_v38, %v427_v27  ;;  %vm453_vm13 = vcmp.gt.f32.partialorder %v380_v38, %v427_v27 }
 0x229   :  { %v382_v43 = vpop.f32.mrf.mxu0 }
 0x22a   :  { %v455_v44 = vmul.f32 %v451_v42, %v449_v40  ;;  %v383_v45 = vadd.f32 %v486_v33, %v382_v43 }
 0x22b   :  { %v544_v46 = vpop.f32.mrf.mxu0 }
 0x22c   :  { %v457_v48 = vsel %vm453_vm13, %v451_v42, %v455_v44  ;;  %v452_v49 = vsub.f32 %v383_v45, %v428_v26  ;;  %vm454_vm14 = vcmp.gt.f32.partialorder %v383_v45, %v428_v26 }
 0x22d   :  { %459 = vst [vmem:[#allocation5] sm:$0xff] %v457_v48 }
 0x22e   :  { %v456_v50 = vmul.f32 %v452_v49, %v450_v47 }
 0x230   :  { %v458_v51 = vsel %vm454_vm14, %v452_v49, %v456_v50 }
 0x231   :  { %460 = vst [vmem:[#allocation5 + $0x8] sm:$0xff] %v458_v51 }
 0x232   :  { %595 = shalt.err (!%p592_p9)
}
 0x233   :  { %s616_s19 = smov 128   ;;  %s617_s20 = smov 8  }
 0x234   :  { %472 = dma.vmem_to_hbm [thread:$0]  %s467_s2, 256, %s746_s8, [#allocation3], %s616_s19, %s616_s19, %s617_s20  }
 0x235   :  { %606 = dma.done.wait [#allocation3], 256  }
 0x236   :  { %607 = vsyncadd [#allocation3], 4294967040 }
 0x237   :  { %476 = vsyncpa [#allocation3], 1 }
 0x238   :  { %477 = vsyncpa [#allocation4], 1 }

</bundles_post_ra>
